<compile_context>
chip_gen: v7x
topology: tpu7x:2x2x1
jax: 0.10.0
libtpu: 0.0.40
codegen_flags: <defaults>
</compile_context>

<pallas_src>
import functools
import math
from typing import NamedTuple

import jax
import jax.numpy as jnp
from jax import lax
from jax.experimental import pallas as pl
from jax.experimental.pallas import tpu as pltpu

INV_SQRT2 = 0.7071067811865476
LANE = 128       # minor (lane) dims padded to a multiple of this
SUBLANE = 8      # row tiles are multiples of this


# ----------------------------------------------------------------------------
# small helpers
# ----------------------------------------------------------------------------
def _gelu_exact(x):
    # PyTorch nn.GELU() default is the exact erf-based GELU.
    return 0.5 * x * (1.0 + lax.erf(x * INV_SQRT2))


def _round_up(a, b):
    return ((a + b - 1) // b) * b


def _cdiv(a, b):
    return (a + b - 1) // b


def _pad_to(a, shape):
    pads = [(0, t - s) for s, t in zip(a.shape, shape)]
    if all(p == (0, 0) for p in pads):
        return a
    return jnp.pad(a, pads)


def _vmem_capacity_bytes():
    """Per-core VMEM capacity (heuristic fallback: 128 MiB)."""
    try:
        cap = getattr(pltpu.get_tpu_info(), "vmem_capacity_bytes", None)
        if cap:
            return int(cap)
    except Exception:
        pass
    return 128 * 1024 * 1024


@functools.lru_cache(maxsize=None)
def _buffered_supported():
    """Narrow feature probe for pl.Buffered(1) single-buffered invariant blocks.

    Probes with a tiny dedicated pallas_call (so lowering issues are caught
    here, not swallowed around the real kernel)."""
    if not hasattr(pl, "Buffered"):
        return False
    try:
        spec = pl.BlockSpec((SUBLANE, LANE), lambda i: (0, 0),
                            pipeline_mode=pl.Buffered(1))

        def k(x_ref, o_ref):
            o_ref[...] = x_ref[...] * 2.0

        out = pl.pallas_call(
            k,
            out_shape=jax.ShapeDtypeStruct((SUBLANE, LANE), jnp.float32),
            grid_spec=pltpu.PrefetchScalarGridSpec(
                num_scalar_prefetch=0,
                grid=(1,),
                in_specs=[spec],
                out_specs=pl.BlockSpec((SUBLANE, LANE), lambda i: (0, 0)),
            ),
        )(jnp.zeros((SUBLANE, LANE), jnp.float32))
        jax.block_until_ready(out)
        return True
    except Exception:
        return False


def _row_tiles(N, tm_cap):
    """Balanced row tiles: waste < SUBLANE rows/tile; prefer >=2 tiles when N
    allows so the 'parallel' row axis can shard across both v7x TensorCores."""
    min_tiles = 2 if N >= 2 * SUBLANE else 1
    n_tiles = max(_cdiv(N, tm_cap), min_tiles)
    tm = min(tm_cap, _round_up(_cdiv(N, n_tiles), SUBLANE))
    n_tiles = _cdiv(N, tm)
    return tm, tm * n_tiles


def _divisor_tile(dim, cap):
    """Largest multiple of LANE that divides `dim` and is <= cap (dim is a
    multiple of LANE)."""
    t = min(cap, dim)
    t -= t % LANE
    t = max(t, LANE)
    while dim % t:
        t -= LANE
    return t


# ----------------------------------------------------------------------------
# kernels
# ----------------------------------------------------------------------------
def _fused_mlp_kernel(x_ref, w1_ref, b1_ref, w2_ref, b2_ref, w3_ref, b3_ref,
                      o_ref):
    cdt = w1_ref.dtype                       # MXU compute dtype (bf16 or f32)
    x = x_ref[...].astype(cdt)
    h = jnp.dot(x, w1_ref[...], preferred_element_type=jnp.float32)
    h = _gelu_exact(h + b1_ref[...].astype(jnp.float32))
    h = jnp.dot(h.astype(cdt), w2_ref[...], preferred_element_type=jnp.float32)
    h = _gelu_exact(h + b2_ref[...].astype(jnp.float32))
    y = jnp.dot(h.astype(cdt), w3_ref[...], preferred_element_type=jnp.float32)
    o_ref[...] = (y + b3_ref[...].astype(jnp.float32)).astype(o_ref.dtype)


def _linear_kernel(x_ref, w_ref, b_ref, o_ref, acc_ref, *, apply_gelu):
    """One tiled Linear (+ optional GELU); K streamed on grid axis 2."""
    @pl.when(pl.program_id(2) == 0)
    def _():
        acc_ref[...] = jnp.zeros_like(acc_ref)

    acc_ref[...] += jnp.dot(x_ref[...].astype(w_ref.dtype), w_ref[...],
                            preferred_element_type=jnp.float32)

    @pl.when(pl.program_id(2) == pl.num_programs(2) - 1)
    def _():
        y = acc_ref[...] + b_ref[...].astype(jnp.float32)
        if apply_gelu:
            y = _gelu_exact(y)
        o_ref[...] = y.astype(o_ref.dtype)


# ----------------------------------------------------------------------------
# parameter preparation (one-time, hoisted out of the hot path)
# ----------------------------------------------------------------------------
class PreparedMLPHead(NamedTuple):
    w1: jax.Array
    b1: jax.Array
    w2: jax.Array
    b2: jax.Array
    w3: jax.Array
    b3: jax.Array
    H: int
    O: int
    Hp: int
    Op: int


def prepare_params(params, compute_dtype=jnp.bfloat16):
    """Pad weights to lane multiples and cast matmul weights to the MXU compute
    dtype (bf16 by default; the MXU on v5e/v6e/v7x is natively bf16).  Biases
    stay in f32 (added after the f32 accumulation).  Call once, reuse."""
    w1, b1, w2, b2, w3, b3 = params
    H, O = int(w1.shape[0]), int(w3.shape[1])
    Hp, Op = _round_up(H, LANE), _round_up(O, LANE)

    def wprep(w, shape):
        return _pad_to(jnp.asarray(w).astype(compute_dtype), shape)

    def bprep(b, n):
        return _pad_to(jnp.asarray(b, jnp.float32).reshape(1, -1), (1, n))

    return PreparedMLPHead(
        w1=wprep(w1, (Hp, Hp)), b1=bprep(b1, Hp),
        w2=wprep(w2, (Hp, Hp)), b2=bprep(b2, Hp),
        w3=wprep(w3, (Hp, Op)), b3=bprep(b3, Op),
        H=H, O=O, Hp=Hp, Op=Op)


# ----------------------------------------------------------------------------
# pallas_call wrappers
# ----------------------------------------------------------------------------
def _fused_call(x_p, weights, tm, Hp, Op, out_dtype, vmem_limit):
    N_pad = x_p.shape[0]
    w1, b1, w2, b2, w3, b3 = weights

    if _buffered_supported():
        # Constant-index weight/bias blocks: one VMEM buffer is enough
        # (halves resident weight VMEM vs. default double-buffering).
        wspec = functools.partial(pl.BlockSpec, pipeline_mode=pl.Buffered(1))
    else:
        wspec = pl.BlockSpec

    bytes_accessed = (x_p.size * x_p.dtype.itemsize
                      + sum(a.size * a.dtype.itemsize for a in weights)
                      + N_pad * Op * jnp.dtype(out_dtype).itemsize)
    cost = pl.CostEstimate(flops=2 * N_pad * (2 * Hp * Hp + Hp * Op),
                           transcendentals=2 * N_pad * Hp,
                           bytes_accessed=int(bytes_accessed))

    return pl.pallas_call(
        _fused_mlp_kernel,
        out_shape=jax.ShapeDtypeStruct((N_pad, Op), out_dtype),
        grid_spec=pltpu.PrefetchScalarGridSpec(
            num_scalar_prefetch=0,
            grid=(N_pad // tm,),
            in_specs=[
                pl.BlockSpec((tm, Hp), lambda i: (i, 0)),   # x rows (streamed)
                wspec((Hp, Hp), lambda i: (0, 0)),          # W1 (resident)
                wspec((1, Hp), lambda i: (0, 0)),           # b1
                wspec((Hp, Hp), lambda i: (0, 0)),          # W2
                wspec((1, Hp), lambda i: (0, 0)),           # b2
                wspec((Hp, Op), lambda i: (0, 0)),          # W3
                wspec((1, Op), lambda i: (0, 0)),           # b3
            ],
            out_specs=pl.BlockSpec((tm, Op), lambda i: (i, 0)),
        ),
        compiler_params=pltpu.CompilerParams(
            dimension_semantics=("parallel",),
            vmem_limit_bytes=int(vmem_limit),
        ),
        cost_estimate=cost,
    )(x_p, w1, b1, w2, b2, w3, b3)


def _linear_call(x2d, w, b, out_dtype, apply_gelu, tm, tk, tn, vmem_limit):
    M, K = x2d.shape
    N = w.shape[1]
    cost = pl.CostEstimate(
        flops=2 * M * K * N,
        transcendentals=(M * N if apply_gelu else 0),
        bytes_accessed=int(x2d.size * x2d.dtype.itemsize
                           + w.size * w.dtype.itemsize
                           + M * N * jnp.dtype(out_dtype).itemsize))
    return pl.pallas_call(
        functools.partial(_linear_kernel, apply_gelu=apply_gelu),
        out_shape=jax.ShapeDtypeStruct((M, N), out_dtype),
        grid_spec=pltpu.PrefetchScalarGridSpec(
            num_scalar_prefetch=0,
            grid=(M // tm, N // tn, K // tk),
            in_specs=[
                pl.BlockSpec((tm, tk), lambda i, j, k: (i, k)),
                pl.BlockSpec((tk, tn), lambda i, j, k: (k, j)),
                pl.BlockSpec((1, tn), lambda i, j, k: (0, j)),
            ],
            out_specs=pl.BlockSpec((tm, tn), lambda i, j, k: (i, j)),
            scratch_shapes=[pltpu.VMEM((tm, tn), jnp.float32)],
        ),
        compiler_params=pltpu.CompilerParams(
            dimension_semantics=("parallel", "parallel", "arbitrary"),
            vmem_limit_bytes=int(vmem_limit),
        ),
        cost_estimate=cost,
    )(x2d, w, b)


def _streamed_call(x_p, prep, tm, out_dtype, budget):
    """Weight-streaming fallback (large H on v7x's 64 MiB/TC): three tiled
    matmul+bias(+GELU) kernels streaming the contraction dim."""
    Hp, Op = prep.Hp, prep.Op
    cdt = prep.w1.dtype
    tk = _divisor_tile(Hp, 512)
    tn_h = _divisor_tile(Hp, 512)
    tn_o = _divisor_tile(Op, 512)
    vmem_limit = min(budget, 64 * 1024 * 1024)

    h = _linear_call(x_p, prep.w1, prep.b1, cdt, True, tm, tk, tn_h, vmem_limit)
    h = _linear_call(h, prep.w2, prep.b2, cdt, True, tm, tk, tn_h, vmem_limit)
    return _linear_call(h, prep.w3, prep.b3, out_dtype, False, tm, tk, tn_o,
                        vmem_limit)


# ----------------------------------------------------------------------------
# public forward
# ----------------------------------------------------------------------------
def mlp_head(x, prep: PreparedMLPHead, mask=None, *, force_streamed=False):
    """x: [..., input_size] -> [..., output_size].  `mask` is accepted for
    interface parity with the PyTorch module but (as in the reference forward)
    unused."""
    del mask
    H, O, Hp, Op = prep.H, prep.O, prep.Hp, prep.Op
    lead = x.shape[:-1]
    x2d = x.reshape(-1, H)
    N = x2d.shape[0]
    out_dtype = x.dtype

    # Generation-aware VMEM / tile budget (v5e/v6e ~128 MiB, v7x 64 MiB/TC).
    cap = _vmem_capacity_bytes()
    budget = int(0.85 * cap)
    tm_cap = 512 if cap >= 100 * 1024 * 1024 else 256

    weights = (prep.w1, prep.b1, prep.w2, prep.b2, prep.w3, prep.b3)
    w_bytes = sum(a.size * a.dtype.itemsize for a in weights)
    w_resident = w_bytes if _buffered_supported() else 2 * w_bytes

    x_isz = x.dtype.itemsize
    o_isz = jnp.dtype(out_dtype).itemsize

    def fused_vmem(tm):
        act = 2 * tm * Hp * x_isz + 2 * tm * Op * o_isz   # double-buffered tiles
        inter = 3 * tm * max(Hp, Op) * 4                  # f32 intermediates
        return w_resident + act + inter

    tm_fused = None
    if not force_streamed and w_resident <= int(0.65 * budget):
        for cand in (tm_cap, 256, 128, 64, 32, 16, SUBLANE):
            if cand <= tm_cap and fused_vmem(cand) <= budget:
                tm_fused = cand
                break

    if tm_fused is not None:
        tm, N_pad = _row_tiles(N, tm_fused)
        x_p = _pad_to(x2d, (N_pad, Hp))
        vmem_limit = min(budget, max(32 * 1024 * 1024, int(1.5 * fused_vmem(tm))))
        out = _fused_call(x_p, weights, tm, Hp, Op, out_dtype, vmem_limit)
    else:
        tm, N_pad = _row_tiles(N, tm_cap)
        x_p = _pad_to(x2d, (N_pad, Hp))
        out = _streamed_call(x_p, prep, tm, out_dtype, budget)

    return out[:N, :O].reshape(*lead, O)


# ----------------------------------------------------------------------------
# init + reference
# ----------------------------------------------------------------------------
def init_params(key, input_size, output_size, dtype=jnp.float32):
    """nn.Linear-style init U(-1/sqrt(fan_in), 1/sqrt(fan_in)); weights are
    returned already transposed to [in, out]."""
    ks = jax.random.split(key, 6)

    def lin(kw, kb, fan_in, fan_out):
        bound = 1.0 / math.sqrt(fan_in)
        w = jax.random.uniform(kw, (fan_in, fan_out), dtype, -bound, bound)
        b = jax.random.uniform(kb, (1, fan_out), dtype, -bound, bound)
        return w, b

    w1, b1 = lin(ks[0], ks[1], input_size, input_size)
    w2, b2 = lin(ks[2], ks[3], input_size, input_size)
    w3, b3 = lin(ks[4], ks[5], input_size, output_size)
    return (w1, b1, w2, b2, w3, b3)


def mlp_head_ref(x, params):
    w1, b1, w2, b2, w3, b3 = params
    hp = lax.Precision.HIGHEST
    h = jax.nn.gelu(jnp.dot(x, w1, precision=hp) + b1.reshape(1, -1),
                    approximate=False)
    h = jax.nn.gelu(jnp.dot(h, w2, precision=hp) + b2.reshape(1, -1),
                    approximate=False)
    return jnp.dot(h, w3, precision=hp) + b3.reshape(1, -1)


if __name__ == "__main__":
    key = jax.random.PRNGKey(0)
    k_x, k_p = jax.random.split(key)

    batch, seq, input_size, output_size = 2, 8, 32, 16
    x = jax.random.normal(k_x, (batch, seq, input_size), dtype=jnp.float32)
    params = init_params(k_p, input_size, output_size)
    ref = mlp_head_ref(x, params)

    # 1) f32 compute path (strict parity with the f32 PyTorch module).
    prep_f32 = prepare_params(params, compute_dtype=jnp.float32)
    out_f32 = jax.block_until_ready(mlp_head(x, prep_f32))
    assert out_f32.shape == (batch, seq, output_size)
    assert jnp.allclose(out_f32, ref, atol=2e-3, rtol=2e-3), (
        float(jnp.max(jnp.abs(out_f32 - ref))))

    # 2) Default bf16-into-the-MXU path (f32 accumulation, f32 bias/GELU).
    prep_bf16 = prepare_params(params, compute_dtype=jnp.bfloat16)
    out_bf16 = jax.block_until_ready(mlp_head(x, prep_bf16))
    assert jnp.allclose(out_bf16, ref, atol=5e-2, rtol=5e-2), (
        float(jnp.max(jnp.abs(out_bf16 - ref))))

    # 3) Weight-streaming fallback path, forced at small shapes so it stays tested.
    out_stream = jax.block_until_ready(mlp_head(x, prep_f32, force_streamed=True))
    assert jnp.allclose(out_stream, ref, atol=2e-3, rtol=2e-3), (
        float(jnp.max(jnp.abs(out_stream - ref))))

    print("KERNEL_OK")
</pallas_src>

<mosaic_0001>
module attributes {stable_mosaic.version = 11 : i64} {
  func.func @k(%arg0: i32, %arg1: memref<8x128xf32, #tpu.memory_space<vmem>>, %arg2: memref<8x128xf32, #tpu.memory_space<vmem>>) attributes {dimension_semantics = [#tpu.dimension_semantics<arbitrary>], iteration_bounds = array<i64: 1>, scalar_prefetch = 0 : i64, scratch_operands = 0 : i64, tpu.core_type = #tpu.core_type<tc>, window_params = [{pipeline_mode = #tpu.pipeline_mode<synchronous>, transform_indices = @transform_0, window_bounds = array<i64: 8, 128>}, {pipeline_mode = #tpu.pipeline_mode<synchronous>, transform_indices = @transform_1, window_bounds = array<i64: 8, 128>}]} {
    %c0 = arith.constant 0 : index
    %c0_0 = arith.constant 0 : index
    %0 = vector.load %arg1[%c0, %c0_0] : memref<8x128xf32, #tpu.memory_space<vmem>>, vector<8x128xf32>
    %cst = arith.constant 2.000000e+00 : f32
    %1 = vector.broadcast %cst : f32 to vector<8x128xf32>
    %2 = arith.mulf %0, %1 : vector<8x128xf32>
    %c0_1 = arith.constant 0 : index
    %c0_2 = arith.constant 0 : index
    %3 = vector.load %arg2[%c0_1, %c0_2] : memref<8x128xf32, #tpu.memory_space<vmem>>, vector<8x128xf32>
    tpu.vector_store %arg2[%c0_1, %c0_2], %2 {strides = array<i32>} : memref<8x128xf32, #tpu.memory_space<vmem>>, vector<8x128xf32>,
    return
  }
  func.func @transform_0(%arg0: i32) -> (i32, i32) {
    %c0_i32 = arith.constant 0 : i32
    %c0_i32_0 = arith.constant 0 : i32
    %c0_i32_1 = arith.constant 0 : i32
    return %c0_i32, %c0_i32_0 : i32, i32
  }
  func.func @transform_1(%arg0: i32) -> (i32, i32) {
    %c0_i32 = arith.constant 0 : i32
    %c0_i32_0 = arith.constant 0 : i32
    %c0_i32_1 = arith.constant 0 : i32
    return %c0_i32, %c0_i32_0 : i32, i32
  }
}

module attributes {stable_mosaic.version = 11 : i64} {
  func.func @_fused_mlp_kernel(%arg0: i32, %arg1: memref<8x128xf32, #tpu.memory_space<vmem>>, %arg2: memref<128x128xf32, #tpu.memory_space<vmem>>, %arg3: memref<1x128xf32, #tpu.memory_space<vmem>>, %arg4: memref<128x128xf32, #tpu.memory_space<vmem>>, %arg5: memref<1x128xf32, #tpu.memory_space<vmem>>, %arg6: memref<128x128xf32, #tpu.memory_space<vmem>>, %arg7: memref<1x128xf32, #tpu.memory_space<vmem>>, %arg8: memref<8x128xf32, #tpu.memory_space<vmem>>) attributes {dimension_semantics = [#tpu.dimension_semantics<parallel>], iteration_bounds = array<i64: 2>, scalar_prefetch = 0 : i64, scratch_operands = 0 : i64, tpu.core_type = #tpu.core_type<tc>, window_params = [{transform_indices = @transform_0, window_bounds = array<i64: 8, 128>}, {pipeline_mode = #tpu.pipeline_mode<synchronous>, transform_indices = @transform_1, window_bounds = array<i64: 128, 128>}, {pipeline_mode = #tpu.pipeline_mode<synchronous>, transform_indices = @transform_2, window_bounds = array<i64: 1, 128>}, {pipeline_mode = #tpu.pipeline_mode<synchronous>, transform_indices = @transform_3, window_bounds = array<i64: 128, 128>}, {pipeline_mode = #tpu.pipeline_mode<synchronous>, transform_indices = @transform_4, window_bounds = array<i64: 1, 128>}, {pipeline_mode = #tpu.pipeline_mode<synchronous>, transform_indices = @transform_5, window_bounds = array<i64: 128, 128>}, {pipeline_mode = #tpu.pipeline_mode<synchronous>, transform_indices = @transform_6, window_bounds = array<i64: 1, 128>}, {transform_indices = @transform_7, window_bounds = array<i64: 8, 128>}]} {
    %c0 = arith.constant 0 : index
    %c0_0 = arith.constant 0 : index
    %0 = vector.load %arg1[%c0, %c0_0] : memref<8x128xf32, #tpu.memory_space<vmem>>, vector<8x128xf32>
    %c0_1 = arith.constant 0 : index
    %c0_2 = arith.constant 0 : index
    %1 = vector.load %arg2[%c0_1, %c0_2] : memref<128x128xf32, #tpu.memory_space<vmem>>, vector<128x128xf32>
    %cst = arith.constant dense<0.000000e+00> : vector<8x128xf32>
    %2 = tpu.matmul %0, %1, %cst {dimension_numbers = #tpu.dot_dimension_numbers<[1], [0], [0], [1], [0, 0, 1, 1], [], []>} : vector<8x128xf32>, vector<128x128xf32>, vector<8x128xf32> -> vector<8x128xf32>
    %c0_3 = arith.constant 0 : index
    %c0_4 = arith.constant 0 : index
    %3 = vector.load %arg3[%c0_3, %c0_4] : memref<1x128xf32, #tpu.memory_space<vmem>>, vector<1x128xf32>
    %4 = vector.broadcast %3 : vector<1x128xf32> to vector<8x128xf32>
    %5 = arith.addf %2, %4 : vector<8x128xf32>
    %cst_5 = arith.constant 5.000000e-01 : f32
    %6 = vector.broadcast %cst_5 : f32 to vector<8x128xf32>
    %7 = arith.mulf %6, %5 : vector<8x128xf32>
    %cst_6 = arith.constant 0.707106769 : f32
    %8 = vector.broadcast %cst_6 : f32 to vector<8x128xf32>
    %9 = arith.mulf %5, %8 : vector<8x128xf32>
    %10 = math.erf %9 : vector<8x128xf32>
    %cst_7 = arith.constant 1.000000e+00 : f32
    %11 = vector.broadcast %cst_7 : f32 to vector<8x128xf32>
    %12 = arith.addf %11, %10 : vector<8x128xf32>
    %13 = arith.mulf %7, %12 : vector<8x128xf32>
    %c0_8 = arith.constant 0 : index
    %c0_9 = arith.constant 0 : index
    %14 = vector.load %arg4[%c0_8, %c0_9] : memref<128x128xf32, #tpu.memory_space<vmem>>, vector<128x128xf32>
    %cst_10 = arith.constant dense<0.000000e+00> : vector<8x128xf32>
    %15 = tpu.matmul %13, %14, %cst_10 {dimension_numbers = #tpu.dot_dimension_numbers<[1], [0], [0], [1], [0, 0, 1, 1], [], []>} : vector<8x128xf32>, vector<128x128xf32>, vector<8x128xf32> -> vector<8x128xf32>
    %c0_11 = arith.constant 0 : index
    %c0_12 = arith.constant 0 : index
    %16 = vector.load %arg5[%c0_11, %c0_12] : memref<1x128xf32, #tpu.memory_space<vmem>>, vector<1x128xf32>
    %17 = vector.broadcast %16 : vector<1x128xf32> to vector<8x128xf32>
    %18 = arith.addf %15, %17 : vector<8x128xf32>
    %cst_13 = arith.constant 5.000000e-01 : f32
    %19 = vector.broadcast %cst_13 : f32 to vector<8x128xf32>
    %20 = arith.mulf %19, %18 : vector<8x128xf32>
    %cst_14 = arith.constant 0.707106769 : f32
    %21 = vector.broadcast %cst_14 : f32 to vector<8x128xf32>
    %22 = arith.mulf %18, %21 : vector<8x128xf32>
    %23 = math.erf %22 : vector<8x128xf32>
    %cst_15 = arith.constant 1.000000e+00 : f32
    %24 = vector.broadcast %cst_15 : f32 to vector<8x128xf32>
    %25 = arith.addf %24, %23 : vector<8x128xf32>
    %26 = arith.mulf %20, %25 : vector<8x128xf32>
    %c0_16 = arith.constant 0 : index
    %c0_17 = arith.constant 0 : index
    %27 = vector.load %arg6[%c0_16, %c0_17] : memref<128x128xf32, #tpu.memory_space<vmem>>, vector<128x128xf32>
    %cst_18 = arith.constant dense<0.000000e+00> : vector<8x128xf32>
    %28 = tpu.matmul %26, %27, %cst_18 {dimension_numbers = #tpu.dot_dimension_numbers<[1], [0], [0], [1], [0, 0, 1, 1], [], []>} : vector<8x128xf32>, vector<128x128xf32>, vector<8x128xf32> -> vector<8x128xf32>
    %c0_19 = arith.constant 0 : index
    %c0_20 = arith.constant 0 : index
    %29 = vector.load %arg7[%c0_19, %c0_20] : memref<1x128xf32, #tpu.memory_space<vmem>>, vector<1x128xf32>
    %30 = vector.broadcast %29 : vector<1x128xf32> to vector<8x128xf32>
    %31 = arith.addf %28, %30 : vector<8x128xf32>
    %c0_21 = arith.constant 0 : index
    %c0_22 = arith.constant 0 : index
    %32 = vector.load %arg8[%c0_21, %c0_22] : memref<8x128xf32, #tpu.memory_space<vmem>>, vector<8x128xf32>
    tpu.vector_store %arg8[%c0_21, %c0_22], %31 {strides = array<i32>} : memref<8x128xf32, #tpu.memory_space<vmem>>, vector<8x128xf32>,
    return
  }
  func.func @transform_0(%arg0: i32) -> (i32, i32) {
    %c0_i32 = arith.constant 0 : i32
    %c0_i32_0 = arith.constant 0 : i32
    return %arg0, %c0_i32 : i32, i32
  }
  func.func @transform_1(%arg0: i32) -> (i32, i32) {
    %c0_i32 = arith.constant 0 : i32
    %c0_i32_0 = arith.constant 0 : i32
    %c0_i32_1 = arith.constant 0 : i32
    return %c0_i32, %c0_i32_0 : i32, i32
  }
  func.func @transform_2(%arg0: i32) -> (i32, i32) {
    %c0_i32 = arith.constant 0 : i32
    %c0_i32_0 = arith.constant 0 : i32
    %c0_i32_1 = arith.constant 0 : i32
    return %c0_i32, %c0_i32_0 : i32, i32
  }
  func.func @transform_3(%arg0: i32) -> (i32, i32) {
    %c0_i32 = arith.constant 0 : i32
    %c0_i32_0 = arith.constant 0 : i32
    %c0_i32_1 = arith.constant 0 : i32
    return %c0_i32, %c0_i32_0 : i32, i32
  }
  func.func @transform_4(%arg0: i32) -> (i32, i32) {
    %c0_i32 = arith.constant 0 : i32
    %c0_i32_0 = arith.constant 0 : i32
    %c0_i32_1 = arith.constant 0 : i32
    return %c0_i32, %c0_i32_0 : i32, i32
  }
  func.func @transform_5(%arg0: i32) -> (i32, i32) {
    %c0_i32 = arith.constant 0 : i32
    %c0_i32_0 = arith.constant 0 : i32
    %c0_i32_1 = arith.constant 0 : i32
    return %c0_i32, %c0_i32_0 : i32, i32
  }
  func.func @transform_6(%arg0: i32) -> (i32, i32) {
    %c0_i32 = arith.constant 0 : i32
    %c0_i32_0 = arith.constant 0 : i32
    %c0_i32_1 = arith.constant 0 : i32
    return %c0_i32, %c0_i32_0 : i32, i32
  }
  func.func @transform_7(%arg0: i32) -> (i32, i32) {
    %c0_i32 = arith.constant 0 : i32
    %c0_i32_0 = arith.constant 0 : i32
    return %arg0, %c0_i32 : i32, i32
  }
}

</mosaic_0001>

<bundles_post_ra>
// kernel: tpu_custom_call.1
= control target key start
LH: loop header
LB: loop body
LE: loop exit
PB: predicated region body
PF: predicated region fallthrough
CT: control target
= control target key end

     0   :  { %6 = vsyncpa [#allocation3], 0  ;;  %s125_s0 = inlined_call_operand.hbm [shape: f32[8,128], index: 0, kind: input, shape index: {}]   ;;  %s126_s1 = inlined_call_operand.hbm [shape: f32[8,128], index: 1, kind: output, shape index: {}]  }
   0x1   :  { %7 = vsyncpa [#allocation4], 0  ;;  %s89_s6 = smov [#allocation2]   ;;  %s41_s10 = scalar_lea.hbm %s125_s0, 128 }
   0x2   :  { %s14_s7 = sshll.u32 %s89_s6, 4  ;;  %p42_p0 = scmp.ne.s32.totalorder %s125_s0, %s41_s10  ;;  %s15_s7 = int_to_ptr.vmem [resolvable:$true] %s14_s7 }
   0x3   :  { %p45_p1 = scmp.lt.u32.totalorder %s41_s10, %s125_s0 }
   0x5   :  { %p47_p2 = pnand %p45_p1, %p42_p0 }
   0x7   :  { %50 = shalt.err (!%p47_p2)
}
   0x8   :  { %s51_s15 = scalar_lea.vmem %s15_s7, 128  ;;  %p56_p4 = scmp.lt.s32.totalorder %s15_s7, %s15_s7 }
   0x9   :  { %p52_p3 = scmp.ne.s32.totalorder %s15_s7, %s51_s15  ;;  %p57_p5 = scmp.lt.s32.totalorder %s51_s15, %s51_s15 }
   0xb   :  { %p58_p6 = por %p57_p5, %p56_p4 }
   0xd   :  { %p59_p7 = pnand %p58_p6, %p52_p3 }
   0xf   :  { %62 = shalt.err (!%p59_p7)
}
  0x10   :  { %17 = dma.hbm_to_vmem [thread:$0]  %s125_s0, 128, %s15_s7, [#allocation3]  }
  0x11   :  { %85 = dma.done.wait [#allocation3], 128  }
  0x12   :  { %86 = vsyncadd [#allocation3], 4294967168  ;;  %s90_s18 = smov [#allocation5]   ;;  %v21_v0 = vld [vmem:[#allocation2] sm:$0xff] }
  0x13   :  { %s30_s19 = sshll.u32 %s90_s18, 4  ;;  %v22_v1 = vmul.f32 2.0, %v21_v0  ;;  %s31_s19 = int_to_ptr.vmem [resolvable:$true] %s30_s19 }
  0x14   :  { %s63_s20 = scalar_lea.vmem %s31_s19, 128  ;;  %p68_p9 = scmp.lt.s32.totalorder %s31_s19, %s31_s19 }
  0x15   :  { %23 = vst [vmem:[#allocation5] sm:$0xff] %v22_v1  ;;  %p64_p8 = scmp.ne.s32.totalorder %s31_s19, %s63_s20  ;;  %p69_p10 = scmp.lt.s32.totalorder %s63_s20, %s63_s20 }
  0x17   :  { %p70_p11 = por %p69_p10, %p68_p9 }
  0x19   :  { %p71_p12 = pnand %p70_p11, %p64_p8 }
  0x1b   :  { %74 = shalt.err (!%p71_p12)
}
  0x1c   :  { %s75_s23 = scalar_lea.hbm %s126_s1, 128 }
  0x1d   :  { %p76_p13 = scmp.ne.s32.totalorder %s126_s1, %s75_s23  ;;  %p79_p0 = scmp.lt.u32.totalorder %s75_s23, %s126_s1 }
  0x1f   :  { %p81_p1 = pnand %p79_p0, %p76_p13 }
  0x21   :  { %84 = shalt.err (!%p81_p1)
}
  0x22   :  { %33 = dma.vmem_to_hbm [thread:$0]  %s31_s19, 128, %s126_s1, [#allocation4]  }
  0x23   :  { %87 = dma.done.wait [#allocation4], 128  }
  0x24   :  { %88 = vsyncadd [#allocation4], 4294967168 }
  0x25   :  { %37 = vsyncpa [#allocation3], 1 }
  0x26   :  { %38 = vsyncpa [#allocation4], 1 }

// kernel: tpu_custom_call.1
= control target key start
LH: loop header
LB: loop body
LE: loop exit
PB: predicated region body
PF: predicated region fallthrough
CT: control target
= control target key end

     0   :  { %12 = vsyncpa [#allocation3], 0  ;;  %s1623_s0 = inlined_call_operand.hbm [shape: f32[16,128], index: 0, kind: input, shape index: {}]   ;;  %s1624_s1 = inlined_call_operand.hbm [shape: f32[128,128], index: 1, kind: input, shape index: {}]   ;;  %s1625_s2 = inlined_call_operand.vmem [shape: f32[1,128], index: 2, kind: input, shape index: {}]   ;;  %s1626_s3 = inlined_call_operand.hbm [shape: f32[128,128], index: 3, kind: input, shape index: {}]   ;;  %s1627_s4 = inlined_call_operand.vmem [shape: f32[1,128], index: 4, kind: input, shape index: {}]   ;;  %s1628_s5 = inlined_call_operand.hbm [shape: f32[128,128], index: 5, kind: input, shape index: {}]   ;;  %s1629_s6 = inlined_call_operand.vmem [shape: f32[1,128], index: 6, kind: input, shape index: {}]   ;;  %s1630_s7 = inlined_call_operand.hbm [shape: f32[16,128], index: 7, kind: output, shape index: {}]  }
   0x1   :  { %14 = vsyncpa [#allocation3 + $0x1], 0 }
   0x2   :  { %15 = vsyncpa [#allocation6], 0 }
   0x3   :  { %16 = vsyncpa [#allocation9], 0 }
   0x4   :  { %17 = vsyncpa [#allocation4], 0 }
   0x5   :  { %19 = vsyncpa [#allocation4 + $0x1], 0  ;;  %s1317_s24 = smov 0   ;;  %s1319_s25 = smov 0  }
   0x6   :  { %s1321_s26 = smov 0   ;;  %s1323_s27 = smov 0  }
   0x7 LB: > { %s1338_s28 = sadd.s32 4294967295, %s1265_s27   ;;  %s742_s29 = sadd.s32 4294967294, %s1265_s27   ;;  %s1265_s27 = sphi %s1323_s27, %s1656_s27   ;;  %s1261_s26 = sphi %s1321_s26, %s1655_s26   ;;  %s1257_s25 = sphi %s1319_s25, %s1654_s25   ;;  %s1253_s24 = sphi %s1317_s24, %s1653_s24  }
   0x8   : > { %p45_p0 = scmp.ne.s32.totalorder %s1257_s25, %s1253_s24  ;;  %p1631_p1 = scmp.eq.s32.totalorder %s1338_s28, 0 }
   0x9   : > { %p201_p3 = scmp.eq.s32.totalorder %s742_s29, 1  ;;  %p743_p5 = scmp.ge.s32.totalorder %s1265_s27, 1 }
   0xa   : > { %p1347_p4 = por %p1631_p1, %p45_p0  ;;  %p208_p7 = scmp.lt.s32.totalorder %s1265_s27, 3 }
   0xb   : > { %p1352_p6 = por %p201_p3, %p45_p0  ;;  %s1267_s10 = smov [#allocation5]  }
   0xc   : > { %s1635_s30 = scalar_select %p1347_p4, 1, 0 }
   0xd   : > { %s1636_s8 = scalar_select %p1352_p6, 1, 0 }
   0xe   : > { %p1357_p8 = pnand %p743_p5, %p208_p7  ;;  %s220_s11 = sshll.u32 %s1267_s10, 4  ;;  %s1361_s11 = int_to_ptr.vmem [resolvable:$true] %s220_s11 }
   0xf   : > { %1637 = sst [smem:[#allocation15_spill]] %s1636_s8  ;;  %s1268_s13 = smov [#allocation7]  }
  0x10   : > { %s1638_s9 = scalar_select %p1357_p8, 1, 0 }
  0x11   : > { %p1007_p9 = pneg %p1357_p8  ;;  %s236_s14 = sshll.u32 %s1268_s13, 4  ;;  %s1372_s14 = int_to_ptr.vmem [resolvable:$true] %s236_s14 }
  0x12   : > { %s1269_s15 = smov [#allocation8]   ;;  %s1077_s19 = scalar_lea.hbm %s1624_s1, 2048 }
  0x13   : > { %p1368_p11 = pnand %p1007_p9, %p1631_p1  ;;  %s1374_s16 = sshll.u32 %s1269_s15, 4  ;;  %s253_s16 = int_to_ptr.vmem [resolvable:$true] %s1374_s16 }
  0x14   : > { %p1078_p12 = scmp.ne.s32.totalorder %s1624_s1, %s1077_s19  ;;  %p1084_p5 = scmp.lt.u32.totalorder %s1077_s19, %s1624_s1 }
  0x15   : > { %p1384_p13 = pneg %p1368_p11 }
  0x17   : > { %p1080_p0 = pnand %p1384_p13, %p1078_p12 }
  0x19   : > { %p1081_p3 = pneg %p1080_p0 }
  0x1b   : > { %p1086_p7 = pnand %p1084_p5, %p1081_p3 }
  0x1d   : > { %1089 = shalt.err (!%p1086_p7)
}
  0x1e   : > { %s1090_s10 = scalar_lea.vmem %s1361_s11, 2048  ;;  %p1098_p2 = scmp.lt.s32.totalorder %s1361_s11, %s1361_s11 }
  0x1f   : > { %p1091_p9 = scmp.ne.s32.totalorder %s1361_s11, %s1090_s10  ;;  %p1099_p6 = scmp.lt.s32.totalorder %s1090_s10, %s1090_s10 }
  0x21   : > { %p1093_p10 = pnand %p1091_p9, %p1384_p13  ;;  %p1100_p12 = por %p1099_p6, %p1098_p2 }
  0x23   : > { %p1094_p1 = pneg %p1093_p10 }
  0x25   : > { %p1101_p0 = pnand %p1100_p12, %p1094_p1 }
  0x27   : > { %1104 = shalt.err (!%p1101_p0)
}
  0x28   : > { %s1270_s13 = smov 128   ;;  %s1271_s15 = smov 8  }
  0x29   : > { %1010 = dma.hbm_to_vmem [thread:$0]  (!%p1368_p11), %s1624_s1, 2048, %s1361_s11, [#allocation6], %s1270_s13, %s1270_s13, %s1271_s15  }
  0x2a   : > { %s1105_s21 = scalar_lea.hbm %s1626_s3, 2048 }
  0x2b   : > { %p1106_p1 = scmp.ne.s32.totalorder %s1626_s3, %s1105_s21  ;;  %p1112_p10 = scmp.lt.u32.totalorder %s1105_s21, %s1626_s3 }
  0x2d   : > { %p1108_p2 = pnand %p1106_p1, %p1384_p13 }
  0x2f   : > { %p1109_p6 = pneg %p1108_p2 }
  0x31   : > { %p1114_p3 = pnand %p1112_p10, %p1109_p6 }
  0x33   : > { %1117 = shalt.err (!%p1114_p3)
}
  0x34   : > { %s1118_s11 = scalar_lea.vmem %s1372_s14, 2048  ;;  %p1126_p12 = scmp.lt.s32.totalorder %s1372_s14, %s1372_s14 }
  0x35   : > { %p1119_p5 = scmp.ne.s32.totalorder %s1372_s14, %s1118_s11  ;;  %p1127_p0 = scmp.lt.s32.totalorder %s1118_s11, %s1118_s11 }
  0x37   : > { %p1121_p7 = pnand %p1119_p5, %p1384_p13  ;;  %p1128_p1 = por %p1127_p0, %p1126_p12 }
  0x39   : > { %p1122_p9 = pneg %p1121_p7 }
  0x3b   : > { %p1129_p2 = pnand %p1128_p1, %p1122_p9 }
  0x3d   : > { %1132 = shalt.err (!%p1129_p2)
}
  0x3e   : > { %1013 = dma.hbm_to_vmem [thread:$0]  (!%p1368_p11), %s1626_s3, 2048, %s1372_s14, [#allocation6], %s1270_s13, %s1270_s13, %s1271_s15  }
  0x3f   : > { %s1133_s20 = scalar_lea.hbm %s1628_s5, 2048 }
  0x40   : > { %p1134_p6 = scmp.ne.s32.totalorder %s1628_s5, %s1133_s20  ;;  %p1140_p5 = scmp.lt.u32.totalorder %s1133_s20, %s1628_s5 }
  0x42   : > { %p1136_p10 = pnand %p1134_p6, %p1384_p13 }
  0x44   : > { %p1137_p3 = pneg %p1136_p10 }
  0x46   : > { %p1142_p7 = pnand %p1140_p5, %p1137_p3 }
  0x48   : > { %1145 = shalt.err (!%p1142_p7)
}
  0x49   : > { %s1146_s11 = scalar_lea.vmem %s253_s16, 2048  ;;  %p1154_p1 = scmp.lt.s32.totalorder %s253_s16, %s253_s16 }
  0x4a   : > { %p1147_p9 = scmp.ne.s32.totalorder %s253_s16, %s1146_s11  ;;  %p1155_p2 = scmp.lt.s32.totalorder %s1146_s11, %s1146_s11 }
  0x4c   : > { %p1149_p12 = pnand %p1147_p9, %p1384_p13  ;;  %p1156_p4 = por %p1155_p2, %p1154_p1 }
  0x4e   : > { %p1150_p0 = pneg %p1149_p12 }
  0x50   : > { %p1157_p8 = pnand %p1156_p4, %p1150_p0 }
  0x52   : > { %1160 = shalt.err (!%p1157_p8)
}
  0x53   : > { %1016 = dma.hbm_to_vmem [thread:$0]  (!%p1368_p11), %s1628_s5, 2048, %s253_s16, [#allocation9], %s1270_s13, %s1270_s13, %s1271_s15  }
  0x54   : > { %s1457_s22 = sadd.s32 1, %s1265_s27   ;;  %s32_s17 = sadd.s32 1, %s1261_s26 }
  0x55   : > { %s29_s12 = ssub.s32 %s1265_s27, %s1457_s22  ;;  %p39_p8 = scmp.ne.s32.totalorder %s1261_s26, %s1257_s25 }
  0x56   : > { %p30_p4 = scmp.eq.s32.totalorder %s29_s12, 0  ;;  %p40_p13 = scmp.eq.s32.totalorder %s1265_s27, 0 }
  0x57   : > { %p1028_p6 = scmp.lt.s32.totalorder %s1265_s27, 2  ;;  %p1641_p3 = scmp.eq.s32.totalorder %s1338_s28, 1 }
  0x58   : > { %s1467_s18 = scalar_select %p30_p4, %s1261_s26, %s32_s17  }
  0x59   : > { %p41_p10 = por %p40_p13, %p39_p8  ;;  %p1471_p5 = por %p1641_p3, %p39_p8 }
  0x5a   : > { %s269_s20 = sand.u32 1, %s1261_s26   ;;  %s749_s21 = sshll.u32 %s1265_s27, 7 }
  0x5b   : > { %s748_s16 = sshll.u32 %s269_s20, 3  ;;  %s1480_s23 = scalar_lea.hbm %s1623_s0, %s749_s21 }
  0x5c   : > { %s273_s29 = scalar_lea.vmem [#allocation2], %s748_s16  ;;  %p1482_p11 = pnand %p1028_p6, %p41_p10 }
  0x5d   : > { %s280_s10 = sshll.u32 %s273_s29, 4  ;;  %s270_s14 = scalar_lea.sflag [#allocation3], %s269_s20  ;;  %s1486_s10 = int_to_ptr.vmem [resolvable:$true] %s280_s10 }
  0x5e   : > { %s1161_s8 = scalar_lea.hbm %s1480_s23, 128  ;;  %p1163_p9 = pneg %p1482_p11 }
  0x5f   : > { %p1162_p7 = scmp.ne.s32.totalorder %s1480_s23, %s1161_s8  ;;  %s1166_s21 = scalar_lea.hbm %s1623_s0, 256 }
  0x60   : > { %p1167_p1 = scmp.lt.u32.totalorder %s1480_s23, %s1623_s0  ;;  %p1168_p2 = scmp.lt.u32.totalorder %s1166_s21, %s1161_s8 }
  0x61   : > { %p1164_p12 = pnand %p1163_p9, %p1162_p7  ;;  %p1170_p8 = scmp.lt.u32.totalorder %s1161_s8, %s1480_s23 }
  0x62   : > { %p1169_p4 = por %p1168_p2, %p1167_p1 }
  0x63   : > { %p1165_p0 = pneg %p1164_p12 }
  0x64   : > { %p1171_p13 = por %p1170_p8, %p1169_p4 }
  0x66   : > { %p1172_p6 = pnand %p1171_p13, %p1165_p0 }
  0x68   : > { %1175 = shalt.err (!%p1172_p6)
}
  0x69   : > { %s1176_s20 = scalar_lea.vmem %s1486_s10, 128  ;;  %s1272_s15 = smov [#allocation2]  }
  0x6a   : > { %p1177_p10 = scmp.ne.s32.totalorder %s1486_s10, %s1176_s20  ;;  %s1181_s29 = sshll.u32 %s1272_s15, 4  ;;  %s1182_s29 = int_to_ptr.vmem [resolvable:$false] %s1181_s29 }
  0x6b   : > { %s1183_s12 = scalar_lea.vmem %s1182_s29, 256  ;;  %p1184_p12 = scmp.lt.s32.totalorder %s1486_s10, %s1182_s29 }
  0x6c   : > { %p1179_p3 = pnand %p1177_p10, %p1163_p9  ;;  %p1185_p1 = scmp.lt.s32.totalorder %s1183_s12, %s1176_s20 }
  0x6e   : > { %p1180_p7 = pneg %p1179_p3  ;;  %p1186_p2 = por %p1185_p1, %p1184_p12 }
  0x70   : > { %p1187_p4 = pnand %p1186_p2, %p1180_p7 }
  0x72   : > { %1190 = shalt.err (!%p1187_p4)
}
  0x73   : > { %1020 = dma.hbm_to_vmem [thread:$0]  (!%p1482_p11), %s1480_s23, 128, %s1486_s10, %s270_s14  }
  0x74   : > { %p1644_p0 = scmp.ne.s32.totalorder %s1638_s9, 0 }
  0x75   : > { %s1516_s8 = sand.u32 (!%p1644_p0), 1, %s1257_s25   ;;  %p1645_p9 = scmp.ne.s32.totalorder (!%p1644_p0), %s1635_s30, 0 }
  0x76   : > { %289 = sbr.rel (%p1644_p0) target bundleno = 858 (0x35a), region = 48  ;;  %s751_s17 = sshll.u32 (!%p1644_p0), %s1516_s8, 3 }
  0x77   : > { %s292_s21 = scalar_lea.sflag (!%p1644_p0), [#allocation3], %s1516_s8  ;;  %s1522_s16 = scalar_lea.vmem (!%p1644_p0), [#allocation2], %s751_s17 }
  0x7d   : > { %1236 = dma.done.wait (%p1645_p9), %s292_s21, 128  }
  0x7e   : > { %1238 = vsyncadd (%p1645_p9), %s292_s21, 4294967168  ;;  %p1646_p11 = scmp.eq.s32.totalorder %s1338_s28, 0 }
  0x80   : > { %1240 = dma.done.wait (%p1646_p11), [#allocation6], 4096   ;;  %p1647_p8 = pmov %p1646_p11 }
  0x82   : > { %1242 = vsyncadd (%p1647_p8), [#allocation6], 4294963200  ;;  %p1648_p13 = pmov %p1647_p8 }
  0x83   : > { %p1649_p6 = pmov %p1647_p8 }
  0x84   : > { %1244 = dma.done.wait (%p1648_p13), [#allocation9], 2048  }
  0x85   : > { %1246 = vsyncadd (%p1649_p6), [#allocation9], 4294965248  ;;  %v1273_v0 = vmov 0.0|0.0   ;;  %vm1274_vm0 = vmmov 0   ;;  %v1275_v1 = vmov 0.0   ;;  %v339_v2 = vld [vmem:[#allocation5] sm:$0xff] }
  0x86   : > { %919 = vmatprep.subr.bf16.mxu0 %v1273_v0  ;;  %846 = vmatprep.mubr.msk.f32.mxu0 %vm1274_vm0, %v1275_v1  ;;  %v340_v3 = vld [vmem:[#allocation5 + $0x8] sm:$0xff]  ;;  %v341_v4 = vld [vmem:[#allocation5 + $0x10] sm:$0xff]  ;;  %v342_v6 = vld [vmem:[#allocation5 + $0x18] sm:$0xff]  ;;  %s760_s13 = sshll.u32 %s1338_s28, 7  ;;  %s337_s20 = scalar_lea.vmem [#allocation10], %s751_s17 }
  0x87   : > { %943 = vmatprep.subr.bf16.mxu1 %v1273_v0  ;;  %881 = vmatprep.mubr.msk.f32.mxu1 %vm1274_vm0, %v1275_v1  ;;  %v920_v5 = vpack.c.bf16 %v340_v3, %v339_v2  ;;  %v923_v7 = vpack.c.bf16 %v342_v6, %v341_v4  ;;  %v343_v8 = vld [vmem:[#allocation5 + $0x20] sm:$0xff]  ;;  %v344_v9 = vld [vmem:[#allocation5 + $0x28] sm:$0xff]  ;;  %v439_v12 = vld [vmem:[#allocation7 + $0x10] sm:$0xff]  ;;  %s643_s15 = sshll.u32 %s337_s20, 4  ;;  %s1579_s21 = scalar_lea.hbm %s1630_s7, %s760_s13  ;;  %s1581_s15 = int_to_ptr.vmem [resolvable:$true] %s643_s15 }
  0x88   : > { %v437_v10 = vld [vmem:[#allocation7] sm:$0xff]  ;;  %v438_v11 = vld [vmem:[#allocation7 + $0x8] sm:$0xff]  ;;  %v440_v13 = vld [vmem:[#allocation7 + $0x18] sm:$0xff]  ;;  %v926_v14 = vpack.c.bf16 %v344_v9, %v343_v8  ;;  %s1191_s30 = scalar_lea.vmem %s1581_s15, 128  ;;  %s1276_s28 = smov [#allocation10]  }
  0x89   : > { %921 = vmatpush3.bf16.msra.mxu0 %v920_v5  ;;  %v944_v15 = vpack.c.bf16 %v438_v11, %v437_v10  ;;  %v345_v16 = vld [vmem:[#allocation5 + $0x30] sm:$0xff]  ;;  %v346_v17 = vld [vmem:[#allocation5 + $0x38] sm:$0xff]  ;;  %v947_v18 = vpack.c.bf16 %v440_v13, %v439_v12  ;;  %v441_v19 = vld [vmem:[#allocation7 + $0x20] sm:$0xff]  ;;  %p1192_p10 = scmp.ne.s32.totalorder %s1581_s15, %s1191_s30  ;;  %s1195_s17 = sshll.u32 %s1276_s28, 4  ;;  %s1196_s17 = int_to_ptr.vmem [resolvable:$false] %s1195_s17 }
  0x8a   : > { %922 = vmatprep.subr.bf16.mxu0 %v1273_v0  ;;  %v442_v20 = vld [vmem:[#allocation7 + $0x28] sm:$0xff]  ;;  %v929_v21 = vpack.c.bf16 %v346_v17, %v345_v16  ;;  %v347_v22 = vld [vmem:[#allocation5 + $0x40] sm:$0xff]  ;;  %v349_v26 = vld [vmem:[#allocation5 + $0x50] sm:$0xff]  ;;  %s1197_s9 = scalar_lea.vmem %s1196_s17, 256  ;;  %p1198_p12 = scmp.lt.s32.totalorder %s1581_s15, %s1196_s17 }
  0x8b   : > { %945 = vmatpush3.bf16.msra.mxu1 %v944_v15  ;;  %v348_v23 = vld [vmem:[#allocation5 + $0x48] sm:$0xff]  ;;  %v950_v24 = vpack.c.bf16 %v442_v20, %v441_v19  ;;  %v350_v27 = vld [vmem:[#allocation5 + $0x58] sm:$0xff]  ;;  %v351_v29 = vld [vmem:[#allocation5 + $0x60] sm:$0xff]  ;;  %p1193_p3 = pnand %p1192_p10, %p1471_p5  ;;  %p1199_p1 = scmp.lt.s32.totalorder %s1197_s9, %s1191_s30 }
  0x8c   : > { %946 = vmatprep.subr.bf16.mxu1 %v1273_v0  ;;  %v932_v25 = vpack.c.bf16 %v348_v23, %v347_v22  ;;  %v935_v28 = vpack.c.bf16 %v350_v27, %v349_v26  ;;  %v352_v30 = vld [vmem:[#allocation5 + $0x68] sm:$0xff]  ;;  %v353_v32 = vld [vmem:[#allocation5 + $0x70] sm:$0xff]  ;;  %v354_v33 = vld [vmem:[#allocation5 + $0x78] sm:$0xff] }
  0x8d   : > { %924 = vmatpush3.bf16.msra.mxu0 %v923_v7  ;;  %v938_v31 = vpack.c.bf16 %v352_v30, %v351_v29  ;;  %v941_v34 = vpack.c.bf16 %v354_v33, %v353_v32  ;;  %v338_v35 = vld [vmem:[%s1522_s16] sm:$0xff]  ;;  %v445_v39 = vld [vmem:[#allocation7 + $0x40] sm:$0xff]  ;;  %v446_v40 = vld [vmem:[#allocation7 + $0x48] sm:$0xff]  ;;  %s630_s16 = scalar_lea.sflag [#allocation4], %s1516_s8  ;;  %p1194_p7 = pneg %p1193_p3 }
  0x8e   : > { %925 = vmatprep.subr.bf16.mxu0 %v1273_v0  ;;  %v443_v36 = vld [vmem:[#allocation7 + $0x30] sm:$0xff]  ;;  %v444_v37 = vld [vmem:[#allocation7 + $0x38] sm:$0xff]  ;;  %v956_v41 = vpack.c.bf16 %v446_v40, %v445_v39  ;;  %v449_v45 = vld [vmem:[#allocation7 + $0x60] sm:$0xff]  ;;  %p1200_p2 = por %p1199_p1, %p1198_p12 }
  0x8f   : > { %948 = vmatpush3.bf16.msra.mxu1 %v947_v18  ;;  %v953_v38 = vpack.c.bf16 %v444_v37, %v443_v36  ;;  %v447_v42 = vld [vmem:[#allocation7 + $0x50] sm:$0xff]  ;;  %v448_v43 = vld [vmem:[#allocation7 + $0x58] sm:$0xff]  ;;  %v450_v46 = vld [vmem:[#allocation7 + $0x68] sm:$0xff] }
  0x90   : > { %949 = vmatprep.subr.bf16.mxu1 %v1273_v0  ;;  %v959_v44 = vpack.c.bf16 %v448_v43, %v447_v42  ;;  %v962_v47 = vpack.c.bf16 %v450_v46, %v449_v45  ;;  %v451_v48 = vld [vmem:[#allocation7 + $0x70] sm:$0xff]  ;;  %v452_v49 = vld [vmem:[#allocation7 + $0x78] sm:$0xff]  ;;  %v535_v51 = vld [vmem:[#allocation8] sm:$0xff]  ;;  %p1201_p4 = pnand %p1200_p2, %p1194_p7 }
  0x91   : > { %927 = vmatpush3.bf16.msra.mxu0 %v926_v14  ;;  %v965_v50 = vpack.c.bf16 %v452_v49, %v451_v48  ;;  %v536_v52 = vld [vmem:[#allocation8 + $0x8] sm:$0xff]  ;;  %v537_v53 = vld [vmem:[#allocation8 + $0x10] sm:$0xff]  ;;  %v538_v55 = vld [vmem:[#allocation8 + $0x18] sm:$0xff] }
  0x92   : > { %928 = vmatprep.subr.bf16.mxu0 %v1273_v0  ;;  %v968_v54 = vpack.c.bf16 %v536_v52, %v535_v51  ;;  %v971_v56 = vpack.c.bf16 %v538_v55, %v537_v53  ;;  %v539_v57 = vld [vmem:[#allocation8 + $0x20] sm:$0xff]  ;;  %v540_v58 = vld [vmem:[#allocation8 + $0x28] sm:$0xff]  ;;  %v756_v60 = vld [vmem:[%s1625_s2] ss:$0 sm:$0xff] }
  0x93   : > { %951 = vmatpush3.bf16.msra.mxu1 %v950_v24  ;;  %v974_v59 = vpack.c.bf16 %v540_v58, %v539_v57  ;;  %v541_v6 = vld [vmem:[#allocation8 + $0x30] sm:$0xff]  ;;  %v542_v7 = vld [vmem:[#allocation8 + $0x38] sm:$0xff]  ;;  %v543_v9 = vld [vmem:[#allocation8 + $0x40] sm:$0xff] }
  0x94   : > { %952 = vmatprep.subr.bf16.mxu1 %v1273_v0  ;;  %v977_v8 = vpack.c.bf16 %v542_v7, %v541_v6  ;;  %v544_v10 = vld [vmem:[#allocation8 + $0x48] sm:$0xff]  ;;  %v545_v12 = vld [vmem:[#allocation8 + $0x50] sm:$0xff]  ;;  %v546_v13 = vld [vmem:[#allocation8 + $0x58] sm:$0xff] }
  0x95   : > { %930 = vmatpush3.bf16.msra.mxu0 %v929_v21  ;;  %v980_v11 = vpack.c.bf16 %v544_v10, %v543_v9  ;;  %v983_v14 = vpack.c.bf16 %v546_v13, %v545_v12  ;;  %v547_v15 = vld [vmem:[#allocation8 + $0x60] sm:$0xff]  ;;  %v548_v16 = vld [vmem:[#allocation8 + $0x68] sm:$0xff]  ;;  %v549_v18 = vld [vmem:[#allocation8 + $0x70] sm:$0xff] }
  0x96   : > { %931 = vmatprep.subr.bf16.mxu0 %v1273_v0  ;;  %v986_v17 = vpack.c.bf16 %v548_v16, %v547_v15  ;;  %v550_v19 = vld [vmem:[#allocation8 + $0x78] sm:$0xff]  ;;  %v757_v21 = vld [vmem:[%s1627_s4] ss:$0 sm:$0xff] }
  0x97   : > { %954 = vmatpush3.bf16.msra.mxu1 %v953_v38  ;;  %v989_v20 = vpack.c.bf16 %v550_v19, %v549_v18  ;;  %v758_v29 = vld [vmem:[%s1629_s6] ss:$0 sm:$0xff] }
  0x98   : > { %955 = vmatprep.subr.bf16.mxu1 %v1273_v0 }
  0x99   : > { %933 = vmatpush3.bf16.msra.mxu0 %v932_v25 }
  0x9a   : > { %934 = vmatprep.subr.bf16.mxu0 %v1273_v0 }
  0x9b   : > { %957 = vmatpush3.bf16.msra.mxu1 %v956_v41 }
  0x9c   : > { %958 = vmatprep.subr.bf16.mxu1 %v1273_v0 }
  0x9d   : > { %936 = vmatpush3.bf16.msra.mxu0 %v935_v28 }
  0x9e   : > { %937 = vmatprep.subr.bf16.mxu0 %v1273_v0 }
  0x9f   : > { %960 = vmatpush3.bf16.msra.mxu1 %v959_v44 }
  0xa0   : > { %961 = vmatprep.subr.bf16.mxu1 %v1273_v0 }
  0xa1   : > { %939 = vmatpush3.bf16.msra.mxu0 %v938_v31 }
  0xa2   : > { %940 = vmatprep.subr.bf16.mxu0 %v1273_v0 }
  0xa3   : > { %963 = vmatpush3.bf16.msra.mxu1 %v962_v47 }
  0xa4   : > { %964 = vmatprep.subr.bf16.mxu1 %v1273_v0 }
  0xa5   : > { %942 = vmatpush3.bf16.msra.mxu0 %v941_v34 }
  0xa6   : > { %967 = vmatprep.subr.bf16.mxu0 %v1273_v0 }
  0xa7   : > { %966 = vmatpush3.bf16.msra.mxu1 %v965_v50 }
  0xa8   : > { %847 = vmatmul.mubr.f32.vlgmr.msra.gmra.mrb[0].mxu0 %v338_v35 }
  0xa9   : > { %916 = vmatprep.mubr.msk.f32.mxu0 %vm1274_vm0, %v1275_v1  ;;  %969 = vmatpush3.bf16.msra.mxu0 %v968_v54 }
  0xaa   : > { %970 = vmatprep.subr.bf16.mxu0 %v1273_v0 }
  0xad   : > { %972 = vmatpush3.bf16.msra.mxu0 %v971_v56 }
  0xae   : > { %973 = vmatprep.subr.bf16.mxu0 %v1273_v0 }
  0xb1   : > { %975 = vmatpush3.bf16.msra.mxu0 %v974_v59 }
  0xb2   : > { %976 = vmatprep.subr.bf16.mxu0 %v1273_v0 }
  0xb5   : > { %978 = vmatpush3.bf16.msra.mxu0 %v977_v8 }
  0xb6   : > { %979 = vmatprep.subr.bf16.mxu0 %v1273_v0 }
  0xb9   : > { %981 = vmatpush3.bf16.msra.mxu0 %v980_v11 }
  0xba   : > { %982 = vmatprep.subr.bf16.mxu0 %v1273_v0 }
  0xbd   : > { %984 = vmatpush3.bf16.msra.mxu0 %v983_v14 }
  0xbe   : > { %985 = vmatprep.subr.bf16.mxu0 %v1273_v0 }
  0xc1   : > { %987 = vmatpush3.bf16.msra.mxu0 %v986_v17 }
  0xc2   : > { %988 = vmatprep.subr.bf16.mxu0 %v1273_v0 }
  0xc5   : > { %990 = vmatpush3.bf16.msra.mxu0 %v989_v20 }
 0x17b   : > { %v428_v61 = vpop.f32.mrb[0].mxu0 }
 0x17c   : > { %v429_v62 = vadd.f32 %v756_v60, %v428_v61  ;;  %v848_v63 = vpop.f32.mrb[1].mxu0 }
 0x17e   : > { %v433_v1 = vmul.f32 0.70710677, %v429_v62  ;;  %v432_v3 = vmul.f32 0.5, %v429_v62 }
 0x180   : > { %1073 = verf.f32 %v433_v1 }
 0x18a   : > { %v1074_v2 = vpop.eup %1073 }
 0x18b   : > { %v435_v4 = vadd.f32 1.0, %v1074_v2 }
 0x18d   : > { %v436_v5 = vmul.f32 %v435_v4, %v432_v3 }
 0x18f   : > { %882 = vmatmul.mubr.f32.vlgmr.msra.gmra.mrb[0].mxu1 %v436_v5 }
 0x262   : > { %v526_v22 = vpop.f32.mrb[0].mxu1 }
 0x263   : > { %v527_v23 = vadd.f32 %v757_v21, %v526_v22  ;;  %v883_v24 = vpop.f32.mrb[1].mxu1 }
 0x265   : > { %v531_v25 = vmul.f32 0.70710677, %v527_v23  ;;  %v530_v27 = vmul.f32 0.5, %v527_v23 }
 0x267   : > { %1075 = verf.f32 %v531_v25 }
 0x271   : > { %v1076_v26 = vpop.eup %1075 }
 0x272   : > { %v533_v28 = vadd.f32 1.0, %v1076_v26 }
 0x274   : > { %v534_v0 = vmul.f32 %v533_v28, %v530_v27 }
 0x276   : > { %917 = vmatmul.mubr.f32.vlgmr.msra.gmra.mrb[2].mxu0 %v534_v0 }
 0x349   : > { %v624_v30 = vpop.f32.mrb[2].mxu0 }
 0x34a   : > { %v625_v31 = vadd.f32 %v758_v29, %v624_v30  ;;  %v918_v32 = vpop.f32.mrb[3].mxu0 }
 0x34c   : > { %628 = vst [vmem:[%s337_s20] sm:$0xff] %v625_v31 }
 0x34d   : > { %1204 = shalt.err (!%p1201_p4)
}
 0x34e   : > { %s1205_s8 = scalar_lea.hbm %s1579_s21, 128  ;;  %s1209_s11 = scalar_lea.hbm %s1630_s7, 256 }
 0x34f   : > { %p1206_p0 = scmp.ne.s32.totalorder %s1579_s21, %s1205_s8  ;;  %p1210_p8 = scmp.lt.u32.totalorder %s1579_s21, %s1630_s7 }
 0x350   : > { %p1211_p13 = scmp.lt.u32.totalorder %s1209_s11, %s1205_s8  ;;  %p1213_p10 = scmp.lt.u32.totalorder %s1205_s8, %s1579_s21 }
 0x351   : > { %p1207_p9 = pnand %p1206_p0, %p1471_p5 }
 0x352   : > { %p1212_p6 = por %p1211_p13, %p1210_p8 }
 0x353   : > { %p1208_p11 = pneg %p1207_p9 }
 0x354   : > { %p1214_p3 = por %p1213_p10, %p1212_p6 }
 0x356   : > { %p1215_p7 = pnand %p1214_p3, %p1208_p11 }
 0x358   : > { %1218 = shalt.err (!%p1215_p7)
}
 0x359   : > { %1005 = dma.vmem_to_hbm [thread:$0]  (%p1471_p5), %s1581_s15, 128, %s1579_s21, %s630_s16  }
 0x35a PF: > { %s1650_s20 = sld [smem:[#allocation15_spill]]  ;;  %s655_s29 = sand.u32 1, %s1253_s24  }
 0x35b   : > { %p1652_p1 = scmp.ge.s32.totalorder %s1265_s27, 2  ;;  %s656_s12 = scalar_lea.sflag [#allocation4], %s655_s29 }
 0x360   : > { %p1651_p12 = scmp.ne.s32.totalorder %s1650_s20, 0 }
 0x362   : > { %p1022_p2 = pnand %p1652_p1, %p1651_p12 }
 0x364   : > { %1248 = dma.done.wait (!%p1022_p2), %s656_s12, 128  }
 0x365   : > { %1250 = vsyncadd (!%p1022_p2), %s656_s12, 4294967168  ;;  %p22_p4 = scmp.ge.s32.totalorder %s1457_s22, 4   ;;  %s1653_s24 = smov %s1257_s25 }
 0x366   : > { %s1654_s25 = smov %s1261_s26  ;;  %s1655_s26 = smov %s1467_s18 }
 0x367   : > { %s1656_s27 = smov %s1457_s22  ;;  %24 = sbr.rel (!%p22_p4) target bundleno = 7 (0x7), region = 105 }
 0x36e   :  { %661 = vsyncpa [#allocation3], 1 }
 0x36f   :  { %663 = vsyncpa [#allocation3 + $0x1], 1 }
 0x370   :  { %664 = vsyncpa [#allocation6], 1 }
 0x371   :  { %665 = vsyncpa [#allocation9], 1 }
 0x372   :  { %666 = vsyncpa [#allocation4], 1 }
 0x373   :  { %668 = vsyncpa [#allocation4 + $0x1], 1 }

</bundles_post_ra>
